<compile_context>
chip_gen: v6e
topology: v6e:2x2x1
jax: 0.10.0
libtpu: 0.0.40
codegen_flags: <defaults>
</compile_context>

<pallas_src>
import functools

import jax
import jax.numpy as jnp
from jax import lax
from jax.experimental import pallas as pl
from jax.experimental.pallas import tpu as pltpu


def _res_linear_kernel(x_mm_ref, w_ref, b_ref, x_res_ref, o_ref, acc_ref):
    # x_mm_ref : (TM, TK)  matmul operand tile of x      (block index (i, k))
    # w_ref    : (TN, TK)  weight tile, native (out, in) (block index (j, k))
    # b_ref    : (1,  TN)  bias tile                     (block index (0, j))
    # x_res_ref: (TM, TN)  residual tile of x            (block index (i, j))
    # o_ref    : (TM, TN)  output tile                   (block index (i, j))
    # acc_ref  : (TM, TN)  f32 accumulator scratch
    k = pl.program_id(2)

    @pl.when(k == 0)
    def _():
        acc_ref[...] = jnp.zeros_like(acc_ref)

    # out = x @ W.T  ==  contract dim 1 of x with dim 1 of W (native layout).
    acc_ref[...] += lax.dot_general(
        x_mm_ref[...], w_ref[...],
        dimension_numbers=(((1,), (1,)), ((), ())),
        preferred_element_type=jnp.float32)

    @pl.when(k == pl.num_programs(2) - 1)
    def _():
        o_ref[...] = (acc_ref[...]
                      + b_ref[...].astype(jnp.float32)
                      + x_res_ref[...].astype(jnp.float32)).astype(o_ref.dtype)


def _round_up(x, m):
    return (x + m - 1) // m * m


@functools.partial(jax.jit, static_argnames=("tm", "tn", "tk"))
def res_layer(x, w, b, *, tm=256, tn=512, tk=512):
    """Residual linear layer: x + (x @ w.T + b).

    x: (N, H), w: (H, H) PyTorch Linear weight (out, in), b: (H,).
    tn/tk default to the same value; keep them equal (or multiples) so the
    padded hidden dim divides both.
    """
    N, H = x.shape

    # ---- tile selection (respect (8,128) tiling; shrink for small shapes) ----
    hp = _round_up(H, 128)
    tn = min(tn, hp)
    tk = min(tk, hp)
    hp = _round_up(_round_up(hp, tn), tk)

    np_ = _round_up(N, 8)
    tm = min(tm, np_)
    np_ = _round_up(np_, tm)

    # ---- zero-pad to tile multiples (padding contributes zeros everywhere) ----
    xp = x if (np_ == N and hp == H) else jnp.pad(x, ((0, np_ - N), (0, hp - H)))
    wp = w if hp == H else jnp.pad(w, ((0, hp - H), (0, hp - H)))
    bp = (b if hp == H else jnp.pad(b, ((0, hp - H),))).reshape(1, hp)

    grid = (np_ // tm, hp // tn, hp // tk)

    itemsize = jnp.dtype(x.dtype).itemsize
    cost = pl.CostEstimate(
        flops=2 * N * H * H,
        transcendentals=0,
        bytes_accessed=itemsize * (3 * N * H + H * H + H),
    )

    out_p = pl.pallas_call(
        _res_linear_kernel,
        out_shape=jax.ShapeDtypeStruct((np_, hp), x.dtype),
        grid_spec=pltpu.PrefetchScalarGridSpec(
            num_scalar_prefetch=0,
            grid=grid,
            in_specs=[
                pl.BlockSpec((tm, tk), lambda i, j, k: (i, k)),   # x for matmul
                pl.BlockSpec((tn, tk), lambda i, j, k: (j, k)),   # W (out, in)
                pl.BlockSpec((1, tn), lambda i, j, k: (0, j)),    # bias
                pl.BlockSpec((tm, tn), lambda i, j, k: (i, j)),   # x for residual
            ],
            out_specs=pl.BlockSpec((tm, tn), lambda i, j, k: (i, j)),
            scratch_shapes=[pltpu.VMEM((tm, tn), jnp.float32)],
        ),
        compiler_params=pltpu.CompilerParams(
            dimension_semantics=("parallel", "parallel", "arbitrary"),
            vmem_limit_bytes=32 * 1024 * 1024,
        ),
        cost_estimate=cost,
    )(xp, wp, bp, xp)

    if np_ == N and hp == H:
        return out_p
    return out_p[:N, :H]


if __name__ == "__main__":
    batch, seq, hidden = 2, 8, 32
    key = jax.random.PRNGKey(0)
    kx, kw, kb = jax.random.split(key, 3)

    # Deterministic synthetic params (shapes match nn.Linear(hidden, hidden)).
    x = jax.random.normal(kx, (batch, seq, hidden), dtype=jnp.float32)
    bound = 1.0 / (hidden ** 0.5)
    w = jax.random.uniform(kw, (hidden, hidden), jnp.float32, -bound, bound)
    b = jax.random.uniform(kb, (hidden,), jnp.float32, -bound, bound)

    x2d = x.reshape(batch * seq, hidden)
    out = res_layer(x2d, w, b)
    out = jax.block_until_ready(out).reshape(batch, seq, hidden)

    # Pure-JAX reference check of the residual forward.
    ref = x + (x @ w.T + b)
    assert jnp.allclose(out, ref, atol=1e-5, rtol=1e-5), "mismatch vs reference"
    print("KERNEL_OK")
</pallas_src>

<mosaic_0001>
module attributes {stable_mosaic.version = 11 : i64} {
  func.func @_res_linear_kernel(%arg0: i32, %arg1: i32, %arg2: i32, %arg3: memref<16x128xf32, #tpu.memory_space<vmem>>, %arg4: memref<128x128xf32, #tpu.memory_space<vmem>>, %arg5: memref<1x128xf32, #tpu.memory_space<vmem>>, %arg6: memref<16x128xf32, #tpu.memory_space<vmem>>, %arg7: memref<16x128xf32, #tpu.memory_space<vmem>>, %arg8: memref<16x128xf32, #tpu.memory_space<vmem>>) attributes {dimension_semantics = [#tpu.dimension_semantics<parallel>, #tpu.dimension_semantics<parallel>, #tpu.dimension_semantics<arbitrary>], iteration_bounds = array<i64: 1, 1, 1>, scalar_prefetch = 0 : i64, scratch_operands = 1 : i64, tpu.core_type = #tpu.core_type<tc>, window_params = [{transform_indices = @transform_0, window_bounds = array<i64: 16, 128>}, {transform_indices = @transform_1, window_bounds = array<i64: 128, 128>}, {transform_indices = @transform_2, window_bounds = array<i64: 1, 128>}, {transform_indices = @transform_3, window_bounds = array<i64: 16, 128>}, {transform_indices = @transform_4, window_bounds = array<i64: 16, 128>}]} {
    %c0_i32 = arith.constant 0 : i32
    %0 = arith.cmpi eq, %arg2, %c0_i32 : i32
    %1 = arith.extui %0 : i1 to i32
    %c0_i32_0 = arith.constant 0 : i32
    %2 = arith.cmpi ne, %1, %c0_i32_0 : i32
    scf.if %2 {
      %cst_10 = arith.constant 0.000000e+00 : f32
      %12 = vector.broadcast %cst_10 : f32 to vector<16x128xf32>
      %c0_11 = arith.constant 0 : index
      %c0_12 = arith.constant 0 : index
      %13 = vector.load %arg8[%c0_11, %c0_12] : memref<16x128xf32, #tpu.memory_space<vmem>>, vector<16x128xf32>
      tpu.vector_store %arg8[%c0_11, %c0_12], %12 {strides = array<i32>} : memref<16x128xf32, #tpu.memory_space<vmem>>, vector<16x128xf32>,
    } else {
    }
    %c0 = arith.constant 0 : index
    %c0_1 = arith.constant 0 : index
    %3 = vector.load %arg8[%c0, %c0_1] : memref<16x128xf32, #tpu.memory_space<vmem>>, vector<16x128xf32>
    %c0_2 = arith.constant 0 : index
    %c0_3 = arith.constant 0 : index
    %4 = vector.load %arg3[%c0_2, %c0_3] : memref<16x128xf32, #tpu.memory_space<vmem>>, vector<16x128xf32>
    %c0_4 = arith.constant 0 : index
    %c0_5 = arith.constant 0 : index
    %5 = vector.load %arg4[%c0_4, %c0_5] : memref<128x128xf32, #tpu.memory_space<vmem>>, vector<128x128xf32>
    %cst = arith.constant dense<0.000000e+00> : vector<16x128xf32>
    %6 = tpu.matmul %4, %5, %cst {dimension_numbers = #tpu.dot_dimension_numbers<[1], [1], [0], [0], [0, 0, 1, 0], [], []>} : vector<16x128xf32>, vector<128x128xf32>, vector<16x128xf32> -> vector<16x128xf32>
    %7 = arith.addf %3, %6 : vector<16x128xf32>
    %c0_6 = arith.constant 0 : index
    %c0_7 = arith.constant 0 : index
    %8 = vector.load %arg8[%c0_6, %c0_7] : memref<16x128xf32, #tpu.memory_space<vmem>>, vector<16x128xf32>
    tpu.vector_store %arg8[%c0_6, %c0_7], %7 {strides = array<i32>} : memref<16x128xf32, #tpu.memory_space<vmem>>, vector<16x128xf32>,
    %c0_i32_8 = arith.constant 0 : i32
    %9 = arith.cmpi eq, %arg2, %c0_i32_8 : i32
    %10 = arith.extui %9 : i1 to i32
    %c0_i32_9 = arith.constant 0 : i32
    %11 = arith.cmpi ne, %10, %c0_i32_9 : i32
    scf.if %11 {
      %c0_10 = arith.constant 0 : index
      %c0_11 = arith.constant 0 : index
      %12 = vector.load %arg8[%c0_10, %c0_11] : memref<16x128xf32, #tpu.memory_space<vmem>>, vector<16x128xf32>
      %c0_12 = arith.constant 0 : index
      %c0_13 = arith.constant 0 : index
      %13 = vector.load %arg5[%c0_12, %c0_13] : memref<1x128xf32, #tpu.memory_space<vmem>>, vector<1x128xf32>
      %14 = vector.broadcast %13 : vector<1x128xf32> to vector<16x128xf32>
      %15 = arith.addf %12, %14 : vector<16x128xf32>
      %c0_14 = arith.constant 0 : index
      %c0_15 = arith.constant 0 : index
      %16 = vector.load %arg6[%c0_14, %c0_15] : memref<16x128xf32, #tpu.memory_space<vmem>>, vector<16x128xf32>
      %17 = arith.addf %15, %16 : vector<16x128xf32>
      %c0_16 = arith.constant 0 : index
      %c0_17 = arith.constant 0 : index
      %18 = vector.load %arg7[%c0_16, %c0_17] : memref<16x128xf32, #tpu.memory_space<vmem>>, vector<16x128xf32>
      tpu.vector_store %arg7[%c0_16, %c0_17], %17 {strides = array<i32>} : memref<16x128xf32, #tpu.memory_space<vmem>>, vector<16x128xf32>,
    } else {
    }
    return
  }
  func.func @transform_0(%arg0: i32, %arg1: i32, %arg2: i32) -> (i32, i32) {
    %c0_i32 = arith.constant 0 : i32
    return %arg0, %arg2 : i32, i32
  }
  func.func @transform_1(%arg0: i32, %arg1: i32, %arg2: i32) -> (i32, i32) {
    %c0_i32 = arith.constant 0 : i32
    return %arg1, %arg2 : i32, i32
  }
  func.func @transform_2(%arg0: i32, %arg1: i32, %arg2: i32) -> (i32, i32) {
    %c0_i32 = arith.constant 0 : i32
    %c0_i32_0 = arith.constant 0 : i32
    return %c0_i32, %arg1 : i32, i32
  }
  func.func @transform_3(%arg0: i32, %arg1: i32, %arg2: i32) -> (i32, i32) {
    %c0_i32 = arith.constant 0 : i32
    return %arg0, %arg1 : i32, i32
  }
  func.func @transform_4(%arg0: i32, %arg1: i32, %arg2: i32) -> (i32, i32) {
    %c0_i32 = arith.constant 0 : i32
    return %arg0, %arg1 : i32, i32
  }
}

</mosaic_0001>

<bundles_post_ra>
// kernel: res_layer.1
= control target key start
LH: loop header
LB: loop body
LE: loop exit
PB: predicated region body
PF: predicated region fallthrough
CT: control target
= control target key end

     0   :  { %s332_s0 = inlined_call_operand.vmem [shape: f32[16,128], index: 0, kind: input, shape index: {}, may-alias: {0,3}]   ;;  %s333_s1 = inlined_call_operand.vmem [shape: f32[128,128], index: 1, kind: input, shape index: {}]   ;;  %s334_s2 = inlined_call_operand.vmem [shape: f32[1,128], index: 2, kind: input, shape index: {}]   ;;  %s335_s3 = inlined_call_operand.vmem [shape: f32[16,128], index: 3, kind: input, shape index: {}, may-alias: {0,3}]   ;;  %s336_s4 = inlined_call_operand.hbm [shape: f32[16,128], index: 4, kind: output, shape index: {}]  }
   0x1   :  { %v43_v0 = vld [vmem:[%s333_s1 + $0x78] sm:$0xff]  ;;  %v42_v1 = vld [vmem:[%s333_s1 + $0x70] sm:$0xff]  ;;  %v41_v2 = vld [vmem:[%s333_s1 + $0x68] sm:$0xff] }
   0x2   :  { %178 = vmatprep.subr.mxu0 %v43_v0  ;;  %v26_v3 = vld [vmem:[%s332_s0] sm:$0xff] }
   0x3   :  { %179 = vmatpush3.xpose.msra.mxu0 %v43_v0  ;;  %210 = vmatprep.mubr.f32.mxu0 %v26_v3 }
   0x4   :  { %180 = vmatprep.subr.mxu0 %v42_v1 }
   0x7   :  { %181 = vmatpush3.xpose.msra.mxu0 %v42_v1 }
   0x8   :  { %9 = vsyncpa [#allocation4], 0  ;;  %182 = vmatprep.subr.mxu0 %v41_v2  ;;  %v40_v4 = vld [vmem:[%s333_s1 + $0x60] sm:$0xff]  ;;  %v39_v5 = vld [vmem:[%s333_s1 + $0x58] sm:$0xff]  ;;  %s238_s29 = smov [#allocation3]  }
   0x9   :  { %v38_v6 = vld [vmem:[%s333_s1 + $0x50] sm:$0xff]  ;;  %v37_v7 = vld [vmem:[%s333_s1 + $0x48] sm:$0xff]  ;;  %v36_v8 = vld [vmem:[%s333_s1 + $0x40] sm:$0xff] }
   0xa   :  { %v35_v9 = vld [vmem:[%s333_s1 + $0x38] sm:$0xff]  ;;  %v34_v10 = vld [vmem:[%s333_s1 + $0x30] sm:$0xff]  ;;  %v33_v11 = vld [vmem:[%s333_s1 + $0x28] sm:$0xff] }
   0xb   :  { %183 = vmatpush3.xpose.msra.mxu0 %v41_v2  ;;  %v32_v12 = vld [vmem:[%s333_s1 + $0x20] sm:$0xff]  ;;  %v31_v13 = vld [vmem:[%s333_s1 + $0x18] sm:$0xff]  ;;  %v30_v14 = vld [vmem:[%s333_s1 + $0x10] sm:$0xff] }
   0xc   :  { %184 = vmatprep.subr.mxu0 %v40_v4  ;;  %v29_v15 = vld [vmem:[%s333_s1 + $0x8] sm:$0xff]  ;;  %v28_v16 = vld [vmem:[%s333_s1] sm:$0xff]  ;;  %s148_s1 = sshll.u32 %s238_s29, 4  ;;  %s149_s1 = int_to_ptr.vmem [resolvable:$true] %s148_s1 }
   0xd   :  { %v27_v17 = vld [vmem:[%s332_s0 + $0x8] sm:$0xff]  ;;  %v159_v18 = vld [vmem:[%s334_s2] ss:$0 sm:$0xff]  ;;  %s216_s0 = scalar_lea.vmem %s149_s1, 256  ;;  %p221_p1 = scmp.lt.s32.totalorder %s149_s1, %s149_s1 }
   0xe   :  { %v138_v20 = vld [vmem:[%s335_s3 + $0x8] sm:$0xff]  ;;  %v137_v23 = vld [vmem:[%s335_s3] sm:$0xff]  ;;  %p217_p0 = scmp.ne.s32.totalorder %s149_s1, %s216_s0  ;;  %p222_p2 = scmp.lt.s32.totalorder %s216_s0, %s216_s0 }
   0xf   :  { %185 = vmatpush3.xpose.msra.mxu0 %v40_v4 }
  0x10   :  { %186 = vmatprep.subr.mxu0 %v39_v5  ;;  %p223_p3 = por %p222_p2, %p221_p1 }
  0x12   :  { %p224_p4 = pnand %p223_p3, %p217_p0 }
  0x13   :  { %187 = vmatpush3.xpose.msra.mxu0 %v39_v5 }
  0x14   :  { %188 = vmatprep.subr.mxu0 %v38_v6 }
  0x17   :  { %189 = vmatpush3.xpose.msra.mxu0 %v38_v6 }
  0x18   :  { %190 = vmatprep.subr.mxu0 %v37_v7 }
  0x1b   :  { %191 = vmatpush3.xpose.msra.mxu0 %v37_v7 }
  0x1c   :  { %192 = vmatprep.subr.mxu0 %v36_v8 }
  0x1f   :  { %193 = vmatpush3.xpose.msra.mxu0 %v36_v8 }
  0x20   :  { %194 = vmatprep.subr.mxu0 %v35_v9 }
  0x23   :  { %195 = vmatpush3.xpose.msra.mxu0 %v35_v9 }
  0x24   :  { %196 = vmatprep.subr.mxu0 %v34_v10 }
  0x27   :  { %197 = vmatpush3.xpose.msra.mxu0 %v34_v10 }
  0x28   :  { %198 = vmatprep.subr.mxu0 %v33_v11 }
  0x2b   :  { %199 = vmatpush3.xpose.msra.mxu0 %v33_v11 }
  0x2c   :  { %200 = vmatprep.subr.mxu0 %v32_v12 }
  0x2f   :  { %201 = vmatpush3.xpose.msra.mxu0 %v32_v12 }
  0x30   :  { %202 = vmatprep.subr.mxu0 %v31_v13 }
  0x33   :  { %203 = vmatpush3.xpose.msra.mxu0 %v31_v13 }
  0x34   :  { %204 = vmatprep.subr.mxu0 %v30_v14 }
  0x37   :  { %205 = vmatpush3.xpose.msra.mxu0 %v30_v14 }
  0x38   :  { %206 = vmatprep.subr.mxu0 %v29_v15 }
  0x3b   :  { %207 = vmatpush3.xpose.msra.mxu0 %v29_v15 }
  0x3c   :  { %208 = vmatprep.subr.mxu0 %v28_v16 }
  0x3f   :  { %209 = vmatpush3.xpose.msra.mxu0 %v28_v16 }
  0x42   :  { %211 = vmatmul.mubr.f32.vlgmr.msra.gmra.mxu0 %v27_v17 }
 0x102   :  { %v212_v19 = vpop.f32.mrf.mxu0 }
 0x103   :  { %v136_v21 = vadd.f32 %v212_v19, %v159_v18 }
 0x104   :  { %v110_v22 = vpop.f32.mrf.mxu0 }
 0x105   :  { %v140_v24 = vadd.f32 %v138_v20, %v136_v21  ;;  %v135_v25 = vadd.f32 %v159_v18, %v110_v22 }
 0x107   :  { %142 = vst [vmem:[#allocation3 + $0x8] sm:$0xff] %v140_v24  ;;  %v139_v26 = vadd.f32 %v137_v23, %v135_v25 }
 0x109   :  { %141 = vst [vmem:[#allocation3] sm:$0xff] %v139_v26 }
 0x10a   :  { %227 = shalt.err (!%p224_p4)
}
 0x10b   :  { %s239_s2 = smov 128   ;;  %s240_s6 = smov 8  }
 0x10c   :  { %154 = dma.vmem_to_hbm [thread:$0]  %s149_s1, 256, %s336_s4, [#allocation4], %s239_s2, %s239_s2, %s240_s6  }
 0x10d   :  { %236 = dma.done.wait [#allocation4], 256  }
 0x10e   :  { %237 = vsyncadd [#allocation4], 4294967040 }
 0x10f   :  { %158 = vsyncpa [#allocation4], 1 }

</bundles_post_ra>
